<compile_context>
chip_gen: v5e
topology: v5e:2x2
jax: 0.10.0
libtpu: 0.0.40
codegen_flags: <defaults>
</compile_context>

<pallas_src>
import jax
import jax.numpy as jnp
from jax.experimental import pallas as pl
from jax.experimental.pallas import tpu as pltpu

_LANES = 128
_SUBLANES = 8


def _relu_kernel(x_ref, o_ref):
    # Elementwise max(x, 0) on the whole VMEM tile (VPU); scalar zero avoids
    # materializing a full-tile zero broadcast.
    o_ref[...] = jnp.maximum(x_ref[...], 0)


def relu(x: jax.Array, *, block_rows: int = 8192) -> jax.Array:
    """ReLU forward: returns max(x, 0), same shape/dtype as x."""
    orig_shape = x.shape
    orig_dtype = x.dtype
    n = x.size

    if n == 0:
        return x

    # Lane-dense 2D slab: (rows, 128).  Pad only to the 8x128 tile boundary
    # (one copy, and only when the size is ragged).  Do NOT pad to a multiple
    # of block_rows -- the grid uses a partial last block instead.
    tile = _SUBLANES * _LANES
    padded_n = pl.cdiv(n, tile) * tile
    padded_rows = padded_n // _LANES

    x_flat = jnp.ravel(x)
    needs_pad = padded_n != n
    if needs_pad:
        x_flat = jnp.pad(x_flat, (0, padded_n - n))
    x2d = x_flat.reshape(padded_rows, _LANES)

    # Block rows: multiple of 8 (sublane rule), clamped to the slab size.
    # Default 8192 rows -> 4 MiB per f32 input block; 2x double-buffered
    # in+out stays well inside the explicit 32 MiB VMEM budget.
    blk = min(block_rows, padded_rows)
    blk = max(_SUBLANES, (blk // _SUBLANES) * _SUBLANES)

    grid = (pl.cdiv(padded_rows, blk),)

    out2d = pl.pallas_call(
        _relu_kernel,
        out_shape=jax.ShapeDtypeStruct((padded_rows, _LANES), orig_dtype),
        grid_spec=pltpu.PrefetchScalarGridSpec(
            num_scalar_prefetch=0,
            grid=grid,
            in_specs=[pl.BlockSpec((blk, _LANES), lambda i: (i, 0))],
            out_specs=pl.BlockSpec((blk, _LANES), lambda i: (i, 0)),
        ),
        compiler_params=pltpu.CompilerParams(
            dimension_semantics=("parallel",),
            vmem_limit_bytes=32 * 1024 * 1024,
        ),
    )(x2d)

    if needs_pad:
        return out2d.reshape(-1)[:n].reshape(orig_shape)
    return out2d.reshape(orig_shape)


# TODO(synk): when this ReLU follows a matmul/conv Pallas kernel in a model,
# fuse it into that kernel's epilogue instead of running it standalone.


if __name__ == "__main__":
    key = jax.random.PRNGKey(0)
    # Small shape consistent with an elementwise module, e.g. NCHW activations.
    x = jax.random.normal(key, (2, 4, 16, 16), dtype=jnp.float32)

    y = relu(x)
    y = jax.block_until_ready(y)

    # Correctness check against plain JAX reference.
    y_ref = jnp.maximum(x, 0.0)
    assert y.shape == x.shape and y.dtype == x.dtype
    assert bool(jnp.allclose(y, y_ref)), "Pallas ReLU mismatch vs reference"

    # Also exercise a ragged size (forces the pad/slice path + partial block).
    x2 = jax.random.normal(jax.random.PRNGKey(0), (3, 5, 7), dtype=jnp.float32)
    y2 = jax.block_until_ready(relu(x2))
    assert bool(jnp.allclose(y2, jnp.maximum(x2, 0.0))), "ragged ReLU mismatch"

    print("KERNEL_OK")
</pallas_src>

<mosaic_0001>
module attributes {stable_mosaic.version = 11 : i64} {
  func.func @_relu_kernel(%arg0: i32, %arg1: memref<16x128xf32, #tpu.memory_space<vmem>>, %arg2: memref<16x128xf32, #tpu.memory_space<vmem>>) attributes {dimension_semantics = [#tpu.dimension_semantics<parallel>], iteration_bounds = array<i64: 1>, scalar_prefetch = 0 : i64, scratch_operands = 0 : i64, tpu.core_type = #tpu.core_type<tc>, window_params = [{transform_indices = @transform_0, window_bounds = array<i64: 16, 128>}, {transform_indices = @transform_1, window_bounds = array<i64: 16, 128>}]} {
    %c0 = arith.constant 0 : index
    %c0_0 = arith.constant 0 : index
    %0 = vector.load %arg1[%c0, %c0_0] : memref<16x128xf32, #tpu.memory_space<vmem>>, vector<16x128xf32>
    %cst = arith.constant 0.000000e+00 : f32
    %1 = vector.broadcast %cst : f32 to vector<16x128xf32>
    %2 = arith.maximumf %0, %1 : vector<16x128xf32>
    %c0_1 = arith.constant 0 : index
    %c0_2 = arith.constant 0 : index
    %3 = vector.load %arg2[%c0_1, %c0_2] : memref<16x128xf32, #tpu.memory_space<vmem>>, vector<16x128xf32>
    tpu.vector_store %arg2[%c0_1, %c0_2], %2 {strides = array<i32>} : memref<16x128xf32, #tpu.memory_space<vmem>>, vector<16x128xf32>,
    return
  }
  func.func @transform_0(%arg0: i32) -> (i32, i32) {
    %c0_i32 = arith.constant 0 : i32
    %c0_i32_0 = arith.constant 0 : i32
    return %arg0, %c0_i32 : i32, i32
  }
  func.func @transform_1(%arg0: i32) -> (i32, i32) {
    %c0_i32 = arith.constant 0 : i32
    %c0_i32_0 = arith.constant 0 : i32
    return %arg0, %c0_i32 : i32, i32
  }
}

</mosaic_0001>

<bundles_post_ra>
// kernel: tpu_custom_call.1
= control target key start
LH: loop header
LB: loop body
LE: loop exit
PB: predicated region body
PF: predicated region fallthrough
CT: control target
= control target key end

     0   :  { %6 = vsyncpa [#allocation3], 0  ;;  %s126_s0 = inlined_call_operand.hbm [shape: f32[16,128], index: 0, kind: input, shape index: {}]   ;;  %s127_s1 = inlined_call_operand.hbm [shape: f32[16,128], index: 1, kind: output, shape index: {}]  }
   0x1   :  { %7 = vsyncpa [#allocation4], 0  ;;  %s12_s8 = sshll.u32 %s126_s0, 4  ;;  %s106_s9 = smov [#allocation2]   ;;  %s13_s8 = int_to_ptr.hbm [resolvable:$true] %s12_s8 }
   0x2   :  { %s14_s10 = sshll.u32 %s106_s9, 4  ;;  %s107_s11 = smov 128   ;;  %s15_s10 = int_to_ptr.vmem [resolvable:$true] %s14_s10 }
   0x3   :  { %s108_s12 = smov 8  }
   0x4   :  { %20 = dma.hbm_to_vmem [thread:$0]  %s13_s8, 256, %s15_s10, [#allocation3], %s107_s11, %s107_s11, %s108_s12  }
   0x5   :  { %102 = dma.done.wait [#allocation3], 256  }
   0x6   :  { %103 = vsyncadd [#allocation3], 4294967040  ;;  %s109_s13 = smov [#allocation5]   ;;  %s37_s17 = sshll.u32 %s127_s1, 4  ;;  %v25_v0 = vld [vmem:[#allocation2] sm:$0xff]  ;;  %v26_v1 = vld [vmem:[#allocation2 + $0x8] sm:$0xff]  ;;  %s38_s17 = int_to_ptr.hbm [resolvable:$true] %s37_s17 }
   0x7   :  { %s35_s14 = sshll.u32 %s109_s13, 4  ;;  %v27_v2 = vmax.f32 %v25_v0, 0.0  ;;  %v28_v3 = vmax.f32 %v26_v1, 0.0  ;;  %s36_s14 = int_to_ptr.vmem [resolvable:$true] %s35_s14 }
   0x9   :  { %29 = vst [vmem:[#allocation5] sm:$0xff] %v27_v2 }
   0xa   :  { %30 = vst [vmem:[#allocation5 + $0x8] sm:$0xff] %v28_v3 }
   0xb   :  { %43 = dma.vmem_to_hbm [thread:$0]  %s36_s14, 256, %s38_s17, [#allocation4], %s107_s11, %s107_s11, %s108_s12  }
   0xc   :  { %104 = dma.done.wait [#allocation4], 256  }
   0xd   :  { %105 = vsyncadd [#allocation4], 4294967040 }
   0xe   :  { %48 = vsyncpa [#allocation3], 1 }
   0xf   :  { %49 = vsyncpa [#allocation4], 1 }

</bundles_post_ra>
